<compile_context>
chip_gen: v6e
topology: v6e:2x2x1
jax: 0.10.0
libtpu: 0.0.40
codegen_flags: <defaults>
</compile_context>

<pallas_src>
import jax
import jax.numpy as jnp
from jax import lax
from jax.experimental import pallas as pl
from jax.experimental.pallas import tpu as pltpu


# ---------------------------------------------------------------------------
# VMEM accounting helpers (padded footprint, native dtype)
# ---------------------------------------------------------------------------

def _round_up(v, m):
    return -(-v // m) * m


def _sublane_tile(dtype):
    it = jnp.dtype(dtype).itemsize
    return max(8, 32 // max(it, 1))     # 8 for f32, 16 for bf16, 32 for int8/fp8


def _block_vmem_bytes(rows, ch, dtype):
    """Bytes one (ch, rows, 128) VMEM block really occupies (sublane-padded)."""
    it = jnp.dtype(dtype).itemsize
    rows_p = _round_up(rows, _sublane_tile(dtype))
    return ch * rows_p * 128 * it


def _pick_row_tile(r_need, c, s, x_dtype, seg_dtype,
                   budget_bytes=12 * 1024 * 1024):
    """Largest row-tile (multiple of 8) whose double-buffered input blocks fit
    in `budget_bytes` (safe under every chip's scoped-VMEM default)."""
    want = _round_up(max(r_need, 1), 8)
    ts = 8
    while ts < want:
        nxt = ts + 8
        need = 2 * (_block_vmem_bytes(nxt, c, x_dtype)
                    + _block_vmem_bytes(nxt, s, seg_dtype))
        if need > budget_bytes:
            break
        ts = nxt
    return ts


# ---------------------------------------------------------------------------
# Kernel
# ---------------------------------------------------------------------------

def _make_kernel(ts, hw_valid, need_mask):
    def kernel(x_ref, seg_ref, num_ref, den_ref, num_acc, den_acc):
        # x_ref: (C, Ts, 128), seg_ref: (S, Ts, 128)
        # num_ref/den_ref: (S, 1) partial outputs per (batch, hw-shard)
        # num_acc/den_acc: (S, 128) f32 VMEM accumulators (vreg-wide)
        t = pl.program_id(2)

        @pl.when(t == 0)
        def _init():
            num_acc[...] = jnp.zeros_like(num_acc)
            den_acc[...] = jnp.zeros_like(den_acc)

        # Upcast on load; all math in f32 (v5e has no bf16 VPU/EUP).
        x = x_ref[...].astype(jnp.float32)        # (C, Ts, 128)
        seg = seg_ref[...].astype(jnp.float32)    # (S, Ts, 128)

        # Channel SUM (the /C is folded into the wrapper's final divide).
        x_sum = jnp.sum(x, axis=0)                # (Ts, 128)

        # Numerically-stable softmax over the segment (leading) axis:
        # pure VPU elementwise max/add across S slices, exp on the EUP.
        m = jnp.max(seg, axis=0)                  # (Ts, 128)
        e = jnp.exp(seg - m[None, :, :])          # (S, Ts, 128)
        inv = 1.0 / jnp.sum(e, axis=0)            # (Ts, 128), exact

        if need_mask:
            # Zero the softmax weights on padded pixels (exact masking).
            blk = pl.program_id(1) * pl.num_programs(2) + t
            base = blk * (ts * 128)
            row = lax.broadcasted_iota(jnp.int32, (ts, 128), 0)
            col = lax.broadcasted_iota(jnp.int32, (ts, 128), 1)
            lin = base + row * 128 + col
            inv = jnp.where(lin < hw_valid, inv, 0.0)

        g = e * inv[None, :, :]                   # softmax weights (S, Ts, 128)

        # Per-step reduction over the row (sublane) axis only -> (S, 128);
        # the cross-lane reduce happens once, in the finalize block.
        num_acc[...] += jnp.sum(g * x_sum[None, :, :], axis=1)
        den_acc[...] += jnp.sum(g, axis=1)

        @pl.when(t == pl.num_programs(2) - 1)
        def _finalize():
            num_ref[...] = jnp.sum(num_acc[...], axis=1, keepdims=True)
            den_ref[...] = jnp.sum(den_acc[...], axis=1, keepdims=True)

    return kernel


# ---------------------------------------------------------------------------
# Wrapper
# ---------------------------------------------------------------------------

def l_brightness(x, seg_map, *, hw_tile_rows=None):
    """x: (B, C, H, W), seg_map: (B, S, H, W) -> (B, S) float32."""
    B, C, H, W = x.shape
    Bs, S, Hs, Ws = seg_map.shape
    assert (Bs, Hs, Ws) == (B, H, W)
    HW = H * W
    r_need = -(-HW // 128)                          # rows of 128 lanes needed

    ts = (hw_tile_rows if hw_tile_rows is not None
          else _pick_row_tile(r_need, C, S, x.dtype, seg_map.dtype))
    assert ts >= 8 and ts % 8 == 0, "hw_tile_rows must be a positive multiple of 8"

    n_t = -(-r_need // ts)                          # row tiles
    R = n_t * ts
    hw_pad = R * 128
    pad = hw_pad - HW

    # Native dtype all the way to VMEM; pad with zeros (mask makes it exact).
    x_flat = x.reshape(B, C, HW)
    seg_flat = seg_map.reshape(B, S, HW)
    if pad:
        x_flat = jnp.pad(x_flat, ((0, 0), (0, 0), (0, pad)))
        seg_flat = jnp.pad(seg_flat, ((0, 0), (0, 0), (0, pad)))
    x4 = x_flat.reshape(B, C, R, 128)
    seg4 = seg_flat.reshape(B, S, R, 128)

    # Optional 2-way parallel split of the spatial reduction (keeps v7x's
    # second TensorCore busy at small batch; just a sequential loop elsewhere).
    P = 2 if (n_t >= 2 and n_t % 2 == 0) else 1
    n_per = n_t // P

    # Real padded VMEM footprint (double-buffered inputs + scratch + outputs),
    # with an explicit limit so no chip relies on its default scoped budget.
    needed = (2 * (_block_vmem_bytes(ts, C, x.dtype)
                   + _block_vmem_bytes(ts, S, seg_map.dtype))
              + 2 * 8 * 128 * 4          # (S,128) accumulators, sublane-padded
              + 4 * 8 * 128 * 4)         # small double-buffered (S,1) outputs
    vmem_limit = max(min(2 * needed + (1 << 20), 60 * 1024 * 1024),
                     16 * 1024 * 1024)

    kernel = _make_kernel(ts, HW, pad > 0)

    num_part, den_part = pl.pallas_call(
        kernel,
        out_shape=(jax.ShapeDtypeStruct((B, P, S, 1), jnp.float32),
                   jax.ShapeDtypeStruct((B, P, S, 1), jnp.float32)),
        grid_spec=pltpu.PrefetchScalarGridSpec(
            num_scalar_prefetch=0,
            grid=(B, P, n_per),
            in_specs=[
                pl.BlockSpec((None, C, ts, 128),
                             lambda b, p, t: (b, 0, p * n_per + t, 0)),
                pl.BlockSpec((None, S, ts, 128),
                             lambda b, p, t: (b, 0, p * n_per + t, 0)),
            ],
            # Output block index constant across the reduction axis ->
            # accumulator-resident; actual store only on the last HW step.
            out_specs=[
                pl.BlockSpec((None, None, S, 1), lambda b, p, t: (b, p, 0, 0)),
                pl.BlockSpec((None, None, S, 1), lambda b, p, t: (b, p, 0, 0)),
            ],
            scratch_shapes=[
                pltpu.VMEM((S, 128), jnp.float32),   # running weighted sum
                pltpu.VMEM((S, 128), jnp.float32),   # running weight sum
            ],
        ),
        compiler_params=pltpu.CompilerParams(
            dimension_semantics=("parallel", "parallel", "arbitrary"),
            vmem_limit_bytes=int(vmem_limit)),
    )(x4, seg4)

    num = jnp.sum(num_part[..., 0], axis=1)          # (B, S)
    den = jnp.sum(den_part[..., 0], axis=1)          # (B, S)
    # numerator carried the channel SUM, so divide by C here (once).
    return num / (den * C)


# ---------------------------------------------------------------------------
# Reference + test
# ---------------------------------------------------------------------------

def _l_brightness_ref(x, seg_map):
    xm = jnp.mean(x.astype(jnp.float32), axis=1, keepdims=True)
    seg = jax.nn.softmax(seg_map.astype(jnp.float32), axis=1)
    wm = jnp.sum(xm * seg, axis=(2, 3))
    ws = jnp.sum(seg, axis=(2, 3))
    return wm / ws


if __name__ == "__main__":
    key = jax.random.PRNGKey(0)
    k1, k2, k3, k4, k5, k6 = jax.random.split(key, 6)
    B, C, S = 2, 3, 4

    # Case 1: 16x16, auto tile (single HW tile; exercises padding + mask).
    x1 = jax.random.uniform(k1, (B, C, 16, 16), jnp.float32, minval=0.1, maxval=1.0)
    s1 = jax.random.normal(k2, (B, S, 16, 16), jnp.float32)
    out1 = jax.block_until_ready(l_brightness(x1, s1))
    ref1 = _l_brightness_ref(x1, s1)
    assert out1.shape == (B, S)
    assert jnp.allclose(out1, ref1, rtol=1e-4, atol=1e-5), float(
        jnp.max(jnp.abs(out1 - ref1)))

    # Case 2: 40x40, forced small tile -> 2-way parallel HW split (P=2).
    x2 = jax.random.uniform(k3, (B, C, 40, 40), jnp.float32, minval=0.1, maxval=1.0)
    s2 = jax.random.normal(k4, (B, S, 40, 40), jnp.float32)
    out2 = jax.block_until_ready(l_brightness(x2, s2, hw_tile_rows=8))
    ref2 = _l_brightness_ref(x2, s2)
    assert jnp.allclose(out2, ref2, rtol=1e-4, atol=1e-5), float(
        jnp.max(jnp.abs(out2 - ref2)))

    # Case 3: 48x48, forced small tile -> multi-step HW accumulation (P=1).
    x3 = jax.random.uniform(k5, (B, C, 48, 48), jnp.float32, minval=0.1, maxval=1.0)
    s3 = jax.random.normal(k6, (B, S, 48, 48), jnp.float32)
    out3 = jax.block_until_ready(l_brightness(x3, s3, hw_tile_rows=8))
    ref3 = _l_brightness_ref(x3, s3)
    assert jnp.allclose(out3, ref3, rtol=1e-4, atol=1e-5), float(
        jnp.max(jnp.abs(out3 - ref3)))

    print("KERNEL_OK")
</pallas_src>

<mosaic_0001>
module attributes {stable_mosaic.version = 11 : i64} {
  func.func @kernel(%arg0: i32, %arg1: i32, %arg2: i32, %arg3: memref<1x3x8x128xf32, #tpu.memory_space<vmem>>, %arg4: memref<1x4x8x128xf32, #tpu.memory_space<vmem>>, %arg5: memref<1x1x4x1xf32, #tpu.memory_space<vmem>>, %arg6: memref<1x1x4x1xf32, #tpu.memory_space<vmem>>, %arg7: memref<4x128xf32, #tpu.memory_space<vmem>>, %arg8: memref<4x128xf32, #tpu.memory_space<vmem>>) attributes {dimension_semantics = [#tpu.dimension_semantics<parallel>, #tpu.dimension_semantics<parallel>, #tpu.dimension_semantics<arbitrary>], iteration_bounds = array<i64: 2, 1, 1>, scalar_prefetch = 0 : i64, scratch_operands = 2 : i64, tpu.core_type = #tpu.core_type<tc>, window_params = [{transform_indices = @transform_0, window_bounds = array<i64: 1, 3, 8, 128>}, {transform_indices = @transform_1, window_bounds = array<i64: 1, 4, 8, 128>}, {transform_indices = @transform_2, window_bounds = array<i64: 1, 1, 4, 1>}, {transform_indices = @transform_3, window_bounds = array<i64: 1, 1, 4, 1>}]} {
    %c0_i32 = arith.constant 0 : i32
    %0 = arith.cmpi eq, %arg2, %c0_i32 : i32
    %1 = arith.extui %0 : i1 to i32
    %c0_i32_0 = arith.constant 0 : i32
    %2 = arith.cmpi ne, %1, %c0_i32_0 : i32
    scf.if %2 {
      %cst_24 = arith.constant 0.000000e+00 : f32
      %47 = vector.broadcast %cst_24 : f32 to vector<4x128xf32>
      %c0_25 = arith.constant 0 : index
      %c0_26 = arith.constant 0 : index
      %48 = vector.load %arg7[%c0_25, %c0_26] : memref<4x128xf32, #tpu.memory_space<vmem>>, vector<4x128xf32>
      tpu.vector_store %arg7[%c0_25, %c0_26], %47 {strides = array<i32>} : memref<4x128xf32, #tpu.memory_space<vmem>>, vector<4x128xf32>,
      %cst_27 = arith.constant 0.000000e+00 : f32
      %49 = vector.broadcast %cst_27 : f32 to vector<4x128xf32>
      %c0_28 = arith.constant 0 : index
      %c0_29 = arith.constant 0 : index
      %50 = vector.load %arg8[%c0_28, %c0_29] : memref<4x128xf32, #tpu.memory_space<vmem>>, vector<4x128xf32>
      tpu.vector_store %arg8[%c0_28, %c0_29], %49 {strides = array<i32>} : memref<4x128xf32, #tpu.memory_space<vmem>>, vector<4x128xf32>,
    } else {
    }
    %c0 = arith.constant 0 : index
    %c0_1 = arith.constant 0 : index
    %c0_2 = arith.constant 0 : index
    %c0_3 = arith.constant 0 : index
    %3 = vector.load %arg3[%c0, %c0_1, %c0_2, %c0_3] : memref<1x3x8x128xf32, #tpu.memory_space<vmem>>, vector<1x3x8x128xf32>
    %4 = vector.shape_cast %3 : vector<1x3x8x128xf32> to vector<3x8x128xf32>
    %c0_4 = arith.constant 0 : index
    %c0_5 = arith.constant 0 : index
    %c0_6 = arith.constant 0 : index
    %c0_7 = arith.constant 0 : index
    %5 = vector.load %arg4[%c0_4, %c0_5, %c0_6, %c0_7] : memref<1x4x8x128xf32, #tpu.memory_space<vmem>>, vector<1x4x8x128xf32>
    %6 = vector.shape_cast %5 : vector<1x4x8x128xf32> to vector<4x8x128xf32>
    %cst = arith.constant dense<0.000000e+00> : vector<8x128xf32>
    %7 = vector.multi_reduction <add>, %4, %cst [0] : vector<3x8x128xf32> to vector<8x128xf32>
    %cst_8 = arith.constant dense<0xFF800000> : vector<8x128xf32>
    %8 = vector.multi_reduction <maximumf>, %6, %cst_8 [0] : vector<4x8x128xf32> to vector<8x128xf32>
    %9 = vector.shape_cast %8 : vector<8x128xf32> to vector<1x8x128xf32>
    %10 = vector.broadcast %9 : vector<1x8x128xf32> to vector<4x8x128xf32>
    %11 = arith.subf %6, %10 : vector<4x8x128xf32>
    %12 = math.exp %11 : vector<4x8x128xf32>
    %cst_9 = arith.constant dense<0.000000e+00> : vector<8x128xf32>
    %13 = vector.multi_reduction <add>, %12, %cst_9 [0] : vector<4x8x128xf32> to vector<8x128xf32>
    %cst_10 = arith.constant 1.000000e+00 : f32
    %14 = vector.broadcast %cst_10 : f32 to vector<8x128xf32>
    %15 = arith.divf %14, %13 : vector<8x128xf32>
    %c1_i32 = arith.constant 1 : i32
    %16 = arith.muli %arg1, %c1_i32 : i32
    %17 = arith.addi %16, %arg2 : i32
    %c1024_i32 = arith.constant 1024 : i32
    %18 = arith.muli %17, %c1024_i32 : i32
    %19 = tpu.iota {dimensions = array<i32: 0>} : vector<8x128xi32>
    %20 = tpu.iota {dimensions = array<i32: 1>} : vector<8x128xi32>
    %c128_i32 = arith.constant 128 : i32
    %21 = vector.broadcast %c128_i32 : i32 to vector<8x128xi32>
    %22 = arith.muli %19, %21 : vector<8x128xi32>
    %23 = vector.broadcast %18 : i32 to vector<8x128xi32>
    %24 = arith.addi %23, %22 : vector<8x128xi32>
    %25 = arith.addi %24, %20 : vector<8x128xi32>
    %c256_i32 = arith.constant 256 : i32
    %26 = vector.broadcast %c256_i32 : i32 to vector<8x128xi32>
    %27 = arith.cmpi slt, %25, %26 : vector<8x128xi32>
    %cst_11 = arith.constant 0.000000e+00 : f32
    %28 = vector.broadcast %cst_11 : f32 to vector<8x128xf32>
    %29 = arith.select %27, %15, %28 : vector<8x128xi1>, vector<8x128xf32>
    %30 = vector.shape_cast %29 : vector<8x128xf32> to vector<1x8x128xf32>
    %31 = vector.broadcast %30 : vector<1x8x128xf32> to vector<4x8x128xf32>
    %32 = arith.mulf %12, %31 : vector<4x8x128xf32>
    %c0_12 = arith.constant 0 : index
    %c0_13 = arith.constant 0 : index
    %33 = vector.load %arg7[%c0_12, %c0_13] : memref<4x128xf32, #tpu.memory_space<vmem>>, vector<4x128xf32>
    %34 = vector.shape_cast %7 : vector<8x128xf32> to vector<1x8x128xf32>
    %35 = vector.broadcast %34 : vector<1x8x128xf32> to vector<4x8x128xf32>
    %36 = arith.mulf %32, %35 : vector<4x8x128xf32>
    %cst_14 = arith.constant dense<0.000000e+00> : vector<4x128xf32>
    %37 = vector.multi_reduction <add>, %36, %cst_14 [1] : vector<4x8x128xf32> to vector<4x128xf32>
    %38 = arith.addf %33, %37 : vector<4x128xf32>
    %c0_15 = arith.constant 0 : index
    %c0_16 = arith.constant 0 : index
    %39 = vector.load %arg7[%c0_15, %c0_16] : memref<4x128xf32, #tpu.memory_space<vmem>>, vector<4x128xf32>
    tpu.vector_store %arg7[%c0_15, %c0_16], %38 {strides = array<i32>} : memref<4x128xf32, #tpu.memory_space<vmem>>, vector<4x128xf32>,
    %c0_17 = arith.constant 0 : index
    %c0_18 = arith.constant 0 : index
    %40 = vector.load %arg8[%c0_17, %c0_18] : memref<4x128xf32, #tpu.memory_space<vmem>>, vector<4x128xf32>
    %cst_19 = arith.constant dense<0.000000e+00> : vector<4x128xf32>
    %41 = vector.multi_reduction <add>, %32, %cst_19 [1] : vector<4x8x128xf32> to vector<4x128xf32>
    %42 = arith.addf %40, %41 : vector<4x128xf32>
    %c0_20 = arith.constant 0 : index
    %c0_21 = arith.constant 0 : index
    %43 = vector.load %arg8[%c0_20, %c0_21] : memref<4x128xf32, #tpu.memory_space<vmem>>, vector<4x128xf32>
    tpu.vector_store %arg8[%c0_20, %c0_21], %42 {strides = array<i32>} : memref<4x128xf32, #tpu.memory_space<vmem>>, vector<4x128xf32>,
    %c0_i32_22 = arith.constant 0 : i32
    %44 = arith.cmpi eq, %arg2, %c0_i32_22 : i32
    %45 = arith.extui %44 : i1 to i32
    %c0_i32_23 = arith.constant 0 : i32
    %46 = arith.cmpi ne, %45, %c0_i32_23 : i32
    scf.if %46 {
      %c0_24 = arith.constant 0 : index
      %c0_25 = arith.constant 0 : index
      %47 = vector.load %arg7[%c0_24, %c0_25] : memref<4x128xf32, #tpu.memory_space<vmem>>, vector<4x128xf32>
      %cst_26 = arith.constant dense<0.000000e+00> : vector<4xf32>
      %48 = vector.multi_reduction <add>, %47, %cst_26 [1] : vector<4x128xf32> to vector<4xf32>
      %49 = vector.shape_cast %48 : vector<4xf32> to vector<4x1xf32>
      %c0_27 = arith.constant 0 : index
      %c0_28 = arith.constant 0 : index
      %c0_29 = arith.constant 0 : index
      %c0_30 = arith.constant 0 : index
      %50 = vector.load %arg5[%c0_27, %c0_28, %c0_29, %c0_30] : memref<1x1x4x1xf32, #tpu.memory_space<vmem>>, vector<1x1x4x1xf32>
      %51 = vector.shape_cast %50 : vector<1x1x4x1xf32> to vector<4x1xf32>
      %52 = vector.shape_cast %49 : vector<4x1xf32> to vector<1x1x4x1xf32>
      tpu.vector_store %arg5[%c0_27, %c0_28, %c0_29, %c0_30], %52 {strides = array<i32>} : memref<1x1x4x1xf32, #tpu.memory_space<vmem>>, vector<1x1x4x1xf32>,
      %c0_31 = arith.constant 0 : index
      %c0_32 = arith.constant 0 : index
      %53 = vector.load %arg8[%c0_31, %c0_32] : memref<4x128xf32, #tpu.memory_space<vmem>>, vector<4x128xf32>
      %cst_33 = arith.constant dense<0.000000e+00> : vector<4xf32>
      %54 = vector.multi_reduction <add>, %53, %cst_33 [1] : vector<4x128xf32> to vector<4xf32>
      %55 = vector.shape_cast %54 : vector<4xf32> to vector<4x1xf32>
      %c0_34 = arith.constant 0 : index
      %c0_35 = arith.constant 0 : index
      %c0_36 = arith.constant 0 : index
      %c0_37 = arith.constant 0 : index
      %56 = vector.load %arg6[%c0_34, %c0_35, %c0_36, %c0_37] : memref<1x1x4x1xf32, #tpu.memory_space<vmem>>, vector<1x1x4x1xf32>
      %57 = vector.shape_cast %56 : vector<1x1x4x1xf32> to vector<4x1xf32>
      %58 = vector.shape_cast %55 : vector<4x1xf32> to vector<1x1x4x1xf32>
      tpu.vector_store %arg6[%c0_34, %c0_35, %c0_36, %c0_37], %58 {strides = array<i32>} : memref<1x1x4x1xf32, #tpu.memory_space<vmem>>, vector<1x1x4x1xf32>,
    } else {
    }
    return
  }
  func.func @transform_0(%arg0: i32, %arg1: i32, %arg2: i32) -> (i32, i32, i32, i32) {
    %c1_i32 = arith.constant 1 : i32
    %0 = arith.muli %arg1, %c1_i32 : i32
    %1 = arith.addi %0, %arg2 : i32
    %c0_i32 = arith.constant 0 : i32
    %c0_i32_0 = arith.constant 0 : i32
    %c0_i32_1 = arith.constant 0 : i32
    return %arg0, %c0_i32, %1, %c0_i32_0 : i32, i32, i32, i32
  }
  func.func @transform_1(%arg0: i32, %arg1: i32, %arg2: i32) -> (i32, i32, i32, i32) {
    %c1_i32 = arith.constant 1 : i32
    %0 = arith.muli %arg1, %c1_i32 : i32
    %1 = arith.addi %0, %arg2 : i32
    %c0_i32 = arith.constant 0 : i32
    %c0_i32_0 = arith.constant 0 : i32
    %c0_i32_1 = arith.constant 0 : i32
    return %arg0, %c0_i32, %1, %c0_i32_0 : i32, i32, i32, i32
  }
  func.func @transform_2(%arg0: i32, %arg1: i32, %arg2: i32) -> (i32, i32, i32, i32) {
    %c0_i32 = arith.constant 0 : i32
    %c0_i32_0 = arith.constant 0 : i32
    %c0_i32_1 = arith.constant 0 : i32
    return %arg0, %arg1, %c0_i32, %c0_i32_0 : i32, i32, i32, i32
  }
  func.func @transform_3(%arg0: i32, %arg1: i32, %arg2: i32) -> (i32, i32, i32, i32) {
    %c0_i32 = arith.constant 0 : i32
    %c0_i32_0 = arith.constant 0 : i32
    %c0_i32_1 = arith.constant 0 : i32
    return %arg0, %arg1, %c0_i32, %c0_i32_0 : i32, i32, i32, i32
  }
}

</mosaic_0001>

<bundles_post_ra>
// kernel: tpu_custom_call.1
= control target key start
LH: loop header
LB: loop body
LE: loop exit
PB: predicated region body
PF: predicated region fallthrough
CT: control target
= control target key end

     0   :  { %9 = vsyncpa [#allocation5], 0  ;;  %s952_s0 = inlined_call_operand.hbm [shape: f32[2,3,8,128], index: 0, kind: input, shape index: {}]   ;;  %s953_s1 = inlined_call_operand.hbm [shape: f32[2,4,8,128], index: 1, kind: input, shape index: {}]   ;;  %s954_s2 = inlined_call_operand.vmem [shape: f32[2,1,4,1], index: 2, kind: output, shape index: {0}]   ;;  %s955_s3 = inlined_call_operand.vmem [shape: f32[2,1,4,1], index: 3, kind: output, shape index: {1}]  }
   0x1   :  { %11 = vsyncpa [#allocation5 + $0x1], 0 }
   0x2   :  { %12 = vsyncpa [#allocation7], 0 }
   0x3   :  { %14 = vsyncpa [#allocation7 + $0x1], 0  ;;  %s816_s12 = smov 0   ;;  %s818_s13 = smov 0  }
   0x4   :  { %s820_s14 = smov 0   ;;  %s822_s15 = smov 0  }
   0x5   :  { %s824_s16 = smov 0   ;;  %s826_s17 = smov 0  }
   0x6 LB: > { %s588_s18 = sadd.s32 4294967295, %s789_s17   ;;  %s39_s19 = sadd.s32 1, %s785_s16  ;;  %s789_s17 = sphi %s826_s17, %s20_s17   ;;  %s785_s16 = sphi %s824_s16, %s963_s16   ;;  %s781_s15 = sphi %s822_s15, %s962_s15   ;;  %s777_s14 = sphi %s820_s14, %s961_s14   ;;  %s773_s13 = sphi %s818_s13, %s960_s13   ;;  %s769_s12 = sphi %s816_s12, %s959_s12  }
   0x7   : > { %p41_p0 = scmp.ge.s32.totalorder %s39_s19, 2  ;;  %s50_s20 = sadd.s32 1, %s777_s14 }
   0x8   : > { %p57_p1 = scmp.ne.s32.totalorder %s777_s14, %s773_s13  ;;  %p58_p2 = scmp.eq.s32.totalorder %s789_s17, 0 }
   0x9   : > { %s965_s19 = smov (%p41_p0, %s39_s19), 0  ;;  %p63_p4 = scmp.ne.s32.totalorder %s773_s13, %s769_s12 }
   0xa   : > { %p59_p3 = por %p58_p2, %p57_p1  ;;  %s45_s21 = ssub.s32 %s785_s16, %s965_s19 }
   0xb   : > { %p64_p5 = scmp.eq.s32.totalorder %s588_s18, 0  ;;  %p48_p6 = scmp.eq.s32.totalorder %s45_s21, 0 }
   0xc   : > { %p617_p8 = scmp.lt.s32.totalorder %s789_s17, 2  ;;  %s864_s24 = sand.u32 1, %s777_s14  }
   0xd   : > { %p855_p7 = por %p64_p5, %p63_p4  ;;  %s604_s25 = smul.u32 384, %s785_s16 }
   0xe   : > { %s861_s23 = scalar_select %p48_p6, %s777_s14, %s50_s20  }
   0xf   : > { %s603_s26 = smul.u32 24, %s864_s24  ;;  %s185_s29 = scalar_lea.hbm %s952_s0, %s604_s25 }
  0x10   : > { %p871_p9 = pnand %p617_p8, %p59_p3  ;;  %s174_s6 = scalar_lea.sflag [#allocation5], %s864_s24 }
  0x11   : > { %s177_s4 = scalar_lea.vmem [#allocation4], %s603_s26  ;;  %s791_s8 = smov [#allocation4]  }
  0x12   : > { %s186_s5 = sshll.u32 %s177_s4, 4  ;;  %p681_p10 = pneg %p871_p9  ;;  %s187_s5 = int_to_ptr.vmem [resolvable:$true] %s186_s5 }
  0x13   : > { %s692_s7 = scalar_lea.vmem %s187_s5, 384  ;;  %s697_s9 = sshll.u32 %s791_s8, 4  ;;  %s698_s9 = int_to_ptr.vmem [resolvable:$false] %s697_s9 }
  0x14   : > { %p693_p11 = scmp.ne.s32.totalorder %s187_s5, %s692_s7  ;;  %s699_s10 = scalar_lea.vmem %s698_s9, 768 }
  0x15   : > { %p700_p0 = scmp.lt.s32.totalorder %s187_s5, %s698_s9  ;;  %p701_p1 = scmp.lt.s32.totalorder %s699_s10, %s692_s7 }
  0x16   : > { %p695_p12 = pnand %p693_p11, %p681_p10 }
  0x17   : > { %p702_p2 = por %p701_p1, %p700_p0 }
  0x18   : > { %p696_p13 = pneg %p695_p12 }
  0x1a   : > { %p703_p3 = pnand %p702_p2, %p696_p13 }
  0x1c   : > { %706 = shalt.err (!%p703_p3)
}
  0x1d   : > { %s792_s11 = smov 128   ;;  %s793_s12 = smov 8  }
  0x1e   : > { %613 = dma.hbm_to_vmem [thread:$0]  (!%p871_p9), %s185_s29, 384, %s187_s5, %s174_s6, %s792_s11, %s792_s11, %s793_s12  }
  0x1f   : > { %p596_p4 = scmp.ge.s32.totalorder %s789_s17, 1  ;;  %p217_p5 = scmp.lt.s32.totalorder %s789_s17, 3 }
  0x20   : > { %s593_s18 = sshll.u32 %s864_s24, 5  ;;  %s602_s21 = sshll.u32 %s785_s16, 9 }
  0x21   : > { %p889_p6 = pnand %p596_p4, %p217_p5  ;;  %s200_s25 = scalar_lea.vmem [#allocation6], %s593_s18 }
  0x22   : > { %s209_s26 = sshll.u32 %s200_s25, 4  ;;  %s208_s4 = scalar_lea.hbm %s953_s1, %s602_s21  ;;  %s210_s26 = int_to_ptr.vmem [resolvable:$true] %s209_s26 }
  0x23   : > { %s197_s7 = scalar_lea.sflag [#allocation7], %s864_s24  ;;  %s720_s8 = scalar_lea.vmem %s210_s26, 512 }
  0x24   : > { %p721_p8 = scmp.ne.s32.totalorder %s210_s26, %s720_s8  ;;  %s794_s29 = smov [#allocation6]  }
  0x25   : > { %s725_s5 = sshll.u32 %s794_s29, 4  ;;  %s726_s5 = int_to_ptr.vmem [resolvable:$false] %s725_s5 }
  0x26   : > { %p723_p11 = pnand %p721_p8, %p681_p10  ;;  %s727_s6 = scalar_lea.vmem %s726_s5, 1024 }
  0x27   : > { %p728_p13 = scmp.lt.s32.totalorder %s210_s26, %s726_s5  ;;  %p729_p0 = scmp.lt.s32.totalorder %s727_s6, %s720_s8 }
  0x28   : > { %p724_p12 = pneg %p723_p11 }
  0x29   : > { %p730_p1 = por %p729_p0, %p728_p13 }
  0x2b   : > { %p731_p2 = pnand %p730_p1, %p724_p12 }
  0x2d   : > { %734 = shalt.err (!%p731_p2)
}
  0x2e   : > { %616 = dma.hbm_to_vmem [thread:$0]  (!%p871_p9), %s208_s4, 512, %s210_s26, %s197_s7, %s792_s11, %s792_s11, %s793_s12  }
  0x2f   : > { %221 = sbr.rel (%p889_p6) target bundleno = 275 (0x113), region = 28  ;;  %s223_s24 = sand.u32 (!%p889_p6), 1, %s773_s13  }
  0x30   : > { %s605_s9 = smul.u32 (!%p889_p6), 24, %s223_s24  ;;  %s224_s10 = scalar_lea.sflag (!%p889_p6), [#allocation5], %s223_s24 }
  0x32   : > { %s909_s18 = scalar_lea.vmem (!%p889_p6), [#allocation4], %s605_s9 }
  0x34   : > { %760 = dma.done.wait (%p855_p7), %s224_s10, 384  }
  0x35   : > { %762 = vsyncadd (%p855_p7), %s224_s10, 4294966912  ;;  %s597_s30 = sshll.u32 %s223_s24, 5  ;;  %s233_s21 = scalar_lea.sflag [#allocation7], %s223_s24 }
  0x36   : > { %s236_s25 = scalar_lea.vmem [#allocation6], %s597_s30 }
  0x37   : > { %764 = dma.done.wait (%p855_p7), %s233_s21, 512  }
  0x38   : > { %766 = vsyncadd (%p855_p7), %s233_s21, 4294966784  ;;  %v795_v0 = vmov 0.0   ;;  %v298_v1 = vld [vmem:[%s236_s25] sm:$0xff]  ;;  %v299_v2 = vld [vmem:[%s236_s25 + $0x8] sm:$0xff]  ;;  %v326_v21 = vlaneseq  ;;  %vm373_vm1 = vcmask 1041409   ;;  %vm375_vm2 = vcmask 1042434  }
  0x39   : > { %293 = vst [vmem:[#allocation2] sm:$0xf] %v795_v0  ;;  %294 = vst [vmem:[#allocation3] sm:$0xf] %v795_v0  ;;  %v300_v3 = vld [vmem:[%s236_s25 + $0x10] sm:$0xff]  ;;  %v301_v4 = vld [vmem:[%s236_s25 + $0x18] sm:$0xff]  ;;  %v304_v5 = vmax.f32 %v298_v1, %v299_v2 }
  0x3a   : > { %v305_v6 = vmax.f32 %v300_v3, %v301_v4  ;;  %v327_v24 = vshrl.u32 %v326_v21, 7  ;;  %v329_v25 = vand.u32 127, %v326_v21  ;;  %v295_v27 = vld [vmem:[%s909_s18] sm:$0xff]  ;;  %v296_v28 = vld [vmem:[%s909_s18 + $0x8] sm:$0xff]  ;;  %v297_v31 = vld [vmem:[%s909_s18 + $0x10] sm:$0xff]  ;;  %vm377_vm3 = vcmask 1043459  }
  0x3b   : > { %v302_v30 = vadd.f32 %v296_v28, %v295_v27  ;;  %vm421_vm4 = vcmask 1043456   ;;  %p275_p7 = scmp.lt.s32.totalorder %s781_s15, 1  ;;  %vm425_vm5 = vcmask 3072  }
  0x3c   : > { %v306_v7 = vmax.f32 %v304_v5, %v305_v6  ;;  %v330_v26 = vmul.u32 128, %v327_v24 }
  0x3d   : > { %v303_v33 = vadd.f32 %v302_v30, %v297_v31  ;;  %s967_s15 = smov (!%p275_p7, %s781_s15), 1 }
  0x3e   : > { %v307_v8 = vsub.f32 %v298_v1, %v306_v7  ;;  %v308_v9 = vsub.f32 %v299_v2, %v306_v7  ;;  %v309_v10 = vsub.f32 %v300_v3, %v306_v7  ;;  %v310_v11 = vsub.f32 %v301_v4, %v306_v7  ;;  %s598_s22 = sshll.u32 %s967_s15, 2 }
  0x3f   : > { %v333_v29 = vadd.s32 %v330_v26, %v329_v25  ;;  %s281_s20 = scalar_lea.vmem %s954_s2, %s598_s22  ;;  %s288_s28 = scalar_lea.vmem %s955_s3, %s598_s22 }
  0x40   : > { %v311_v12 = vmul.f32 1.442695, %v307_v8  ;;  %v313_v13 = vmul.f32 1.442695, %v308_v9  ;;  %v315_v14 = vmul.f32 1.442695, %v309_v10 }
  0x41   : > { %v317_v15 = vmul.f32 1.442695, %v310_v11  ;;  %vm334_vm0 = vcmp.lt.s32.totalorder %v333_v29, 256  ;;  %v382_v27 = vld [vmem:[#allocation3] sm:$0xf] }
  0x42   : > { %669 = vpow2.f32 %v311_v12  ;;  %v340_v29 = vld [vmem:[#allocation2] sm:$0xf] }
  0x43   : > { %671 = vpow2.f32 %v313_v13 }
  0x44   : > { %673 = vpow2.f32 %v315_v14 }
  0x45   : > { %675 = vpow2.f32 %v317_v15 }
  0x4f   : > { %v670_v16 = vpop.eup %669 }
  0x50   : > { %v672_v17 = vpop.eup %671 }
  0x51   : > { %v674_v18 = vpop.eup %673  ;;  %v319_v19 = vadd.f32 %v672_v17, %v670_v16 }
  0x52   : > { %v676_v20 = vpop.eup %675 }
  0x53   : > { %v320_v22 = vadd.f32 %v674_v18, %v319_v19 }
  0x55   : > { %v321_v23 = vadd.f32 %v676_v20, %v320_v22 }
  0x57   : > { %677 = vrcp.f32 %v321_v23 }
  0x64   : > { %v678_v32 = vpop.eup %677 }
  0x65   : > { %v335_v34 = vsel %vm334_vm0, %v678_v32, 0.0 }
  0x66   : > { %v336_v35 = vmul.f32 %v670_v16, %v335_v34  ;;  %v337_v36 = vmul.f32 %v672_v17, %v335_v34  ;;  %v338_v37 = vmul.f32 %v674_v18, %v335_v34  ;;  %v339_v38 = vmul.f32 %v676_v20, %v335_v34 }
  0x68   : > { %v341_v39 = vmul.f32 %v336_v35, %v303_v33  ;;  %v342_v40 = vmul.f32 %v337_v36, %v303_v33  ;;  %v343_v41 = vmul.f32 %v338_v37, %v303_v33  ;;  %v344_v42 = vmul.f32 %v339_v38, %v303_v33 }
  0x69   : > { %v383_v43 = vrot.slane %v336_v35, 4  ;;  %v389_v44 = vrot.slane %v337_v36, 4  ;;  %v395_v45 = vrot.slane %v338_v37, 4  ;;  %v401_v46 = vrot.slane %v339_v38, 4 }
  0x6a   : > { %v345_v47 = vrot.slane %v341_v39, 4  ;;  %v351_v48 = vrot.slane %v342_v40, 4  ;;  %v357_v49 = vrot.slane %v343_v41, 4  ;;  %v363_v50 = vrot.slane %v344_v42, 4 }
  0x6b   : > { %v384_v51 = vadd.f32 %v383_v43, %v336_v35  ;;  %v390_v52 = vadd.f32 %v389_v44, %v337_v36  ;;  %v396_v53 = vadd.f32 %v395_v45, %v338_v37  ;;  %v402_v54 = vadd.f32 %v401_v46, %v339_v38 }
  0x6c   : > { %v346_v55 = vadd.f32 %v345_v47, %v341_v39  ;;  %v352_v56 = vadd.f32 %v351_v48, %v342_v40  ;;  %v358_v57 = vadd.f32 %v357_v49, %v343_v41  ;;  %v364_v58 = vadd.f32 %v363_v50, %v344_v42 }
  0x6d   : > { %v385_v59 = vrot.slane %v384_v51, 2  ;;  %v391_v60 = vrot.slane %v390_v52, 2  ;;  %v397_v61 = vrot.slane %v396_v53, 2  ;;  %v403_v62 = vrot.slane %v402_v54, 2 }
  0x6e   : > { %v347_v63 = vrot.slane %v346_v55, 2  ;;  %v353_v0 = vrot.slane %v352_v56, 2  ;;  %v359_v1 = vrot.slane %v358_v57, 2  ;;  %v365_v2 = vrot.slane %v364_v58, 2 }
  0x6f   : > { %v386_v3 = vadd.f32 %v385_v59, %v384_v51  ;;  %v392_v4 = vadd.f32 %v391_v60, %v390_v52  ;;  %v398_v5 = vadd.f32 %v397_v61, %v396_v53  ;;  %v404_v6 = vadd.f32 %v403_v62, %v402_v54 }
  0x70   : > { %v348_v7 = vadd.f32 %v347_v63, %v346_v55  ;;  %v354_v8 = vadd.f32 %v353_v0, %v352_v56  ;;  %v360_v9 = vadd.f32 %v359_v1, %v358_v57  ;;  %v366_v10 = vadd.f32 %v365_v2, %v364_v58 }
  0x71   : > { %v387_v11 = vrot.slane %v386_v3, 1  ;;  %v393_v12 = vrot.slane %v392_v4, 1  ;;  %v399_v13 = vrot.slane %v398_v5, 1  ;;  %v405_v14 = vrot.slane %v404_v6, 1 }
  0x72   : > { %v349_v15 = vrot.slane %v348_v7, 1  ;;  %v355_v16 = vrot.slane %v354_v8, 1  ;;  %v361_v17 = vrot.slane %v360_v9, 1  ;;  %v367_v18 = vrot.slane %v366_v10, 1 }
  0x73   : > { %v388_v19 = vadd.f32 %v387_v11, %v386_v3  ;;  %v394_v20 = vadd.f32 %v393_v12, %v392_v4  ;;  %v400_v21 = vadd.f32 %v399_v13, %v398_v5  ;;  %v406_v22 = vadd.f32 %v405_v14, %v404_v6 }
  0x74   : > { %v350_v23 = vadd.f32 %v349_v15, %v348_v7  ;;  %v356_v24 = vadd.f32 %v355_v16, %v354_v8  ;;  %v362_v25 = vadd.f32 %v361_v17, %v360_v9  ;;  %v368_v26 = vadd.f32 %v367_v18, %v366_v10 }
  0x75   : > { %v411_v28 = vsel %vm373_vm1, %v394_v20, %v388_v19 }
  0x76   : > { %v374_v30 = vsel %vm373_vm1, %v356_v24, %v350_v23  ;;  %v412_v31 = vsel %vm375_vm2, %v400_v21, %v411_v28 }
  0x77   : > { %v376_v32 = vsel %vm375_vm2, %v362_v25, %v374_v30  ;;  %v413_v33 = vsel %vm377_vm3, %v406_v22, %v412_v31 }
  0x78   : > { %v378_v34 = vsel %vm377_vm3, %v368_v26, %v376_v32  ;;  %v415_v35 = vadd.f32 %v413_v33, %v382_v27 }
  0x79   : > { %v380_v36 = vadd.f32 %v378_v34, %v340_v29 }
  0x7a   : > { %416 = vst [vmem:[#allocation3] sm:$0xf] %v415_v35 }
  0x7b   : > { %381 = vst [vmem:[#allocation2] sm:$0xf] %v380_v36 }
  0x81   : > { %v427_v38 = vld [vmem:[#allocation3] sm:$0xf] }
  0x82   : > { %v420_v37 = vld [vmem:[#allocation2] sm:$0xf]  ;;  %v428_v40 = vsel %vm421_vm4, %v427_v38, 0.0 }
  0x83   : > { %v422_v39 = vsel %vm421_vm4, %v420_v37, 0.0 }
  0x84   : > { %423 = vadd.xlane.f32.xlu0 %v422_v39 }
  0x88   : > { %429 = vadd.xlane.f32.xlu0 %v428_v40 }
 0x10d   : > { %v424_v41 = vpop.xlane.xlu0 %423 }
 0x10e   : > { %426 = vst.msk [vmem:[%s281_s20] sm:$0xf] %vm425_vm5, %v424_v41 }
 0x111   : > { %v430_v42 = vpop.xlane.xlu0 %429 }
 0x112   : > { %431 = vst.msk [vmem:[%s288_s28] sm:$0xf] %vm425_vm5, %v430_v42 }
 0x113 PF: > { %s20_s17 = sadd.s32 1, %s789_s17   ;;  %s959_s12 = smov %s773_s13 }
 0x114   : > { %p17_p9 = scmp.ge.s32.totalorder %s20_s17, 4   ;;  %s960_s13 = smov %s777_s14 }
 0x115   : > { %s961_s14 = smov %s861_s23  ;;  %s962_s15 = smov %s785_s16 }
 0x116   : > { %s963_s16 = smov %s965_s19  ;;  %19 = sbr.rel (!%p17_p9) target bundleno = 6 (0x6), region = 101 }
 0x11b   :  { %477 = vsyncpa [#allocation5], 1 }
 0x11c   :  { %479 = vsyncpa [#allocation5 + $0x1], 1 }
 0x11d   :  { %480 = vsyncpa [#allocation7], 1 }
 0x11e   :  { %482 = vsyncpa [#allocation7 + $0x1], 1 }

</bundles_post_ra>
